<compile_context>
chip_gen: v6e
topology: v6e:2x2x1
jax: 0.10.0
libtpu: 0.0.40
codegen_flags: <defaults>
</compile_context>

<pallas_src>
import functools

import jax
import jax.numpy as jnp
from jax.experimental import pallas as pl
from jax.experimental.pallas import tpu as pltpu

KSIZE = 3
CIN = 4
CMID = 32


# ----------------------------- Pallas kernel --------------------------------
def _conv_head_kernel(x_ref, w1t_ref, b1_ref, w2t_ref, b2_ref, out_ref,
                      *, h, wp, block_n):
    """Fused conv3x3 + ReLU + 1x1 head for a block of `block_n` images.

    x_ref  : (block_n, Cin, F)     zero-padded images, flat spatial minor
                                   (F = (h+3)*wp, wp = w+2)         (VMEM)
    w1t_ref: (Cmid, 9*Cin)         conv3x3 weights, transposed      (VMEM)
    b1_ref : (Cmid, 1)             conv3x3 bias (column vector)     (VMEM)
    w2t_ref: (1, Cmid)             1x1-conv weights, transposed     (VMEM)
    b2_ref : (1,)                  1x1-conv bias                    (SMEM)
    out_ref: (1, 1, block_n*h*wp)  lane-dense output row            (VMEM)

    Output column q = b*h*wp + i*wp + j; columns with j >= w are harmless
    padding-tap garbage that the host slices off.
    """
    cin = x_ref.shape[1]
    m = h * wp  # per-image M (includes the 2 padding columns per row)

    # Fused im2col: each 3x3 tap is a contiguous lane-slice of the flat image
    # (input rows and output columns share stride wp), stacked along the
    # contraction axis -> one deep K = 9*Cin matmul instead of nine K=Cin.
    cols = []
    for b in range(block_n):
        taps = []
        for kh in range(KSIZE):
            for kw in range(KSIZE):
                off = kh * wp + kw
                taps.append(x_ref[b, :, off:off + m])        # (Cin, m)
        cols.append(jnp.concatenate(taps, axis=0))           # (9*Cin, m)
    patches = cols[0] if block_n == 1 else jnp.concatenate(cols, axis=1)

    # conv3x3 as a single MXU contraction; accumulator is lane-dense (Cmid, M).
    acc = jnp.dot(w1t_ref[...], patches,
                  preferred_element_type=jnp.float32)         # (Cmid, B*m)

    # bias + ReLU (VPU); features stay in VMEM (adapt step omitted).
    feat = jnp.maximum(acc + b1_ref[...], 0.0)                # (Cmid, B*m)

    # 1x1 head: (1, Cmid) . (Cmid, B*m) -> lane-dense (1, B*m) output row.
    head = jnp.dot(w2t_ref[...], feat,
                   preferred_element_type=jnp.float32)        # (1, B*m)

    out_ref[0] = head + b2_ref[0]


def _pick_block_n(n, cin, flat_len, vmem_budget_bytes=4 << 20):
    """Images per grid step: VMEM-bounded, divides n, keeps >= 2 grid steps."""
    sub = -(-cin // 8) * 8
    lane = -(-flat_len // 128) * 128
    per_img = sub * lane * 4                 # layout-padded f32 input bytes
    max_b = max(1, vmem_budget_bytes // (per_img * 2))   # x2: double-buffered
    cap = max(1, min(max_b, n // 2 if n >= 2 else 1))    # keep both v7x TCs fed
    for b in range(int(cap), 0, -1):
        if n % b == 0:
            return b
    return 1


def conv_model_pallas(x_flat, w1t, b1c, w2t, b2, h, w):
    """x_flat: (N, Cin, F) f32 padded-flat images -> (N/B, 1, B*h*(w+2)) f32."""
    n, cin, flat = x_flat.shape
    cmid = w1t.shape[0]
    wp = w + 2 * (KSIZE // 2)
    m = h * wp
    block_n = _pick_block_n(n, cin, flat)
    num_blocks = n // block_n

    kernel = functools.partial(_conv_head_kernel, h=h, wp=wp, block_n=block_n)
    return pl.pallas_call(
        kernel,
        out_shape=jax.ShapeDtypeStruct((num_blocks, 1, block_n * m),
                                       jnp.float32),
        grid=(num_blocks,),
        in_specs=[
            pl.BlockSpec((block_n, cin, flat), lambda i: (i, 0, 0)),
            pl.BlockSpec((cmid, KSIZE * KSIZE * cin), lambda i: (0, 0)),
            pl.BlockSpec((cmid, 1), lambda i: (0, 0)),
            pl.BlockSpec((1, cmid), lambda i: (0, 0)),
            pl.BlockSpec(memory_space=pltpu.MemorySpace.SMEM),   # b2 scalar
        ],
        out_specs=pl.BlockSpec((1, 1, block_n * m), lambda i: (i, 0, 0)),
        compiler_params=pltpu.CompilerParams(
            dimension_semantics=("parallel",),
            vmem_limit_bytes=32 * 1024 * 1024),
    )(x_flat, w1t, b1c, w2t, b2)


# ------------------------------ host glue ------------------------------------
def init_params(key, cin=CIN, cmid=CMID, k=KSIZE):
    """Deterministic synthetic parameter init (conv3x3 + conv1x1 shapes)."""
    k1, k2, k3, k4 = jax.random.split(key, 4)
    w1 = jax.random.normal(k1, (k, k, cin, cmid), jnp.float32) * 0.1
    b1 = jax.random.normal(k2, (1, cmid), jnp.float32) * 0.01
    w2 = jax.random.normal(k3, (cmid, 1), jnp.float32) * 0.1
    b2 = jax.random.normal(k4, (1, 1), jnp.float32) * 0.01
    return {"w1": w1, "b1": b1, "w2": w2, "b2": b2}


@jax.jit
def model_forward(params, x_nchw):
    """Synthetic model(x) -> outputs in NCHW (features never leave VMEM)."""
    n, c, h, w = x_nchw.shape
    pad = KSIZE // 2
    wp = w + 2 * pad
    # Zero pad 'same' (+1 spare zero row so every tap's lane slice of the
    # garbage padding columns stays in bounds), then flatten spatial dims.
    xp = jnp.pad(x_nchw, ((0, 0), (0, 0), (pad, pad + 1), (pad, pad)))
    x_flat = xp.reshape(n, c, (h + 2 * pad + 1) * wp)         # (N, Cin, F)

    w1t = params["w1"].reshape(KSIZE * KSIZE * c, CMID).T     # (Cmid, 9*Cin)
    b1c = params["b1"].reshape(CMID, 1)                       # (Cmid, 1)
    w2t = params["w2"].reshape(1, CMID)                       # (1, Cmid)
    b2 = params["b2"].reshape(1)                              # SMEM scalar

    out_flat = conv_model_pallas(x_flat, w1t, b1c, w2t, b2, h, w)
    # (N/B, 1, B*h*wp) -> (N, 1, h, wp) -> drop the padding columns (NCHW).
    return out_flat.reshape(n, 1, h, wp)[:, :, :, :w]


def _reference_forward(params, x_nchw):
    """Pure-jnp reference of the same synthetic model (sanity check)."""
    n, c, h, w = x_nchw.shape
    pad = KSIZE // 2
    xp = jnp.pad(x_nchw, ((0, 0), (0, 0), (pad, pad), (pad, pad)))
    acc = jnp.zeros((n, CMID, h, w), jnp.float32)
    for kh in range(KSIZE):
        for kw in range(KSIZE):
            acc = acc + jnp.einsum("nchw,cm->nmhw",
                                   xp[:, :, kh:kh + h, kw:kw + w],
                                   params["w1"][kh, kw])
    feat = jnp.maximum(acc + params["b1"].reshape(1, CMID, 1, 1), 0.0)
    out = (jnp.einsum("nmhw,mo->nohw", feat, params["w2"])
           + params["b2"].reshape(1, 1, 1, 1))
    return out


class OER:
    """JAX/Pallas port of the OER test-time-adaptation wrapper.

    forward(x) with weak=None returns model(x)[0] detached (the pre-update
    prediction), matching forward_and_adapt's return value.
    """

    def __init__(self, params, steps=1, episodic=False):
        assert steps > 0, "tent requires >= 1 step(s) to forward and update"
        self.params = params
        self.steps = steps
        self.episodic = episodic
        # TODO(synk): episodic reset() from saved model/optimizer state is a
        # training-time side effect with no kernel equivalent; omitted.

    def forward(self, x, weak=None, strong=None):
        outputs = None
        for _ in range(self.steps):
            if weak is not None:
                # TODO(synk): fixmatch path (L1 loss backward + optimizer.step)
                # is a training-time side effect; only the returned prediction
                # on x (with the update skipped) is computed.
                outputs = model_forward(self.params, x)
            else:
                # TODO(synk): ordinalentropy(features, outputs) loss,
                # loss.backward() and optimizer.step() parameter updates are
                # omitted; only the returned (detached) prediction is computed.
                outputs = model_forward(self.params, x)
        return outputs

    __call__ = forward


if __name__ == "__main__":
    key = jax.random.PRNGKey(0)
    kx, kp = jax.random.split(key)
    x = jax.random.normal(kx, (2, 4, 16, 16), jnp.float32)   # NCHW
    params = init_params(kp)

    oer = OER(params, steps=1, episodic=False)
    outputs = oer(x)                       # weak=None path -> forward_and_adapt
    outputs = jax.block_until_ready(outputs)

    assert outputs.shape == (2, 1, 16, 16)
    assert outputs.dtype == jnp.float32

    ref = jax.block_until_ready(_reference_forward(params, x))
    err = float(jnp.max(jnp.abs(outputs - ref)))
    assert err < 1e-4, f"kernel/reference mismatch: max abs err {err}"

    print("KERNEL_OK")
</pallas_src>

<mosaic_0001>
module attributes {stable_mosaic.version = 11 : i64} {
  func.func @_conv_head_kernel(%arg0: i32, %arg1: memref<1x4x342xf32, #tpu.memory_space<vmem>>, %arg2: memref<32x36xf32, #tpu.memory_space<vmem>>, %arg3: memref<32x1xf32, #tpu.memory_space<vmem>>, %arg4: memref<1x32xf32, #tpu.memory_space<vmem>>, %arg5: memref<1xf32, #tpu.memory_space<smem>>, %arg6: memref<1x1x288xf32, #tpu.memory_space<vmem>>) attributes {dimension_semantics = [#tpu.dimension_semantics<parallel>], iteration_bounds = array<i64: 2>, scalar_prefetch = 0 : i64, scratch_operands = 0 : i64, tpu.core_type = #tpu.core_type<tc>, window_params = [{transform_indices = @transform_0, window_bounds = array<i64: 1, 4, 342>}, {pipeline_mode = #tpu.pipeline_mode<synchronous>, transform_indices = @transform_1, window_bounds = array<i64: 32, 36>}, {pipeline_mode = #tpu.pipeline_mode<synchronous>, transform_indices = @transform_2, window_bounds = array<i64: 32, 1>}, {pipeline_mode = #tpu.pipeline_mode<synchronous>, transform_indices = @transform_3, window_bounds = array<i64: 1, 32>}, {transform_indices = @transform_4, window_bounds = array<i64: 1>}, {transform_indices = @transform_5, window_bounds = array<i64: 1, 1, 288>}]} {
    %c0 = arith.constant 0 : index
    %c0_0 = arith.constant 0 : index
    %c0_1 = arith.constant 0 : index
    %0 = vector.load %arg1[%c0, %c0_0, %c0_1] : memref<1x4x342xf32, #tpu.memory_space<vmem>>, vector<1x4x288xf32>
    %1 = vector.shape_cast %0 : vector<1x4x288xf32> to vector<4x288xf32>
    %c0_2 = arith.constant 0 : index
    %c0_3 = arith.constant 0 : index
    %c1 = arith.constant 1 : index
    %2 = vector.load %arg1[%c0_2, %c0_3, %c1] : memref<1x4x342xf32, #tpu.memory_space<vmem>>, vector<1x4x288xf32>
    %3 = vector.shape_cast %2 : vector<1x4x288xf32> to vector<4x288xf32>
    %c0_4 = arith.constant 0 : index
    %c0_5 = arith.constant 0 : index
    %c2 = arith.constant 2 : index
    %4 = vector.load %arg1[%c0_4, %c0_5, %c2] : memref<1x4x342xf32, #tpu.memory_space<vmem>>, vector<1x4x288xf32>
    %5 = vector.shape_cast %4 : vector<1x4x288xf32> to vector<4x288xf32>
    %c0_6 = arith.constant 0 : index
    %c0_7 = arith.constant 0 : index
    %c18 = arith.constant 18 : index
    %6 = vector.load %arg1[%c0_6, %c0_7, %c18] : memref<1x4x342xf32, #tpu.memory_space<vmem>>, vector<1x4x288xf32>
    %7 = vector.shape_cast %6 : vector<1x4x288xf32> to vector<4x288xf32>
    %c0_8 = arith.constant 0 : index
    %c0_9 = arith.constant 0 : index
    %c19 = arith.constant 19 : index
    %8 = vector.load %arg1[%c0_8, %c0_9, %c19] : memref<1x4x342xf32, #tpu.memory_space<vmem>>, vector<1x4x288xf32>
    %9 = vector.shape_cast %8 : vector<1x4x288xf32> to vector<4x288xf32>
    %c0_10 = arith.constant 0 : index
    %c0_11 = arith.constant 0 : index
    %c20 = arith.constant 20 : index
    %10 = vector.load %arg1[%c0_10, %c0_11, %c20] : memref<1x4x342xf32, #tpu.memory_space<vmem>>, vector<1x4x288xf32>
    %11 = vector.shape_cast %10 : vector<1x4x288xf32> to vector<4x288xf32>
    %c0_12 = arith.constant 0 : index
    %c0_13 = arith.constant 0 : index
    %c36 = arith.constant 36 : index
    %12 = vector.load %arg1[%c0_12, %c0_13, %c36] : memref<1x4x342xf32, #tpu.memory_space<vmem>>, vector<1x4x288xf32>
    %13 = vector.shape_cast %12 : vector<1x4x288xf32> to vector<4x288xf32>
    %c0_14 = arith.constant 0 : index
    %c0_15 = arith.constant 0 : index
    %c37 = arith.constant 37 : index
    %14 = vector.load %arg1[%c0_14, %c0_15, %c37] : memref<1x4x342xf32, #tpu.memory_space<vmem>>, vector<1x4x288xf32>
    %15 = vector.shape_cast %14 : vector<1x4x288xf32> to vector<4x288xf32>
    %c0_16 = arith.constant 0 : index
    %c0_17 = arith.constant 0 : index
    %c38 = arith.constant 38 : index
    %16 = vector.load %arg1[%c0_16, %c0_17, %c38] : memref<1x4x342xf32, #tpu.memory_space<vmem>>, vector<1x4x288xf32>
    %17 = vector.shape_cast %16 : vector<1x4x288xf32> to vector<4x288xf32>
    %18 = tpu.concatenate %1, %3, %5, %7, %9, %11, %13, %15, %17 in 0 : vector<4x288xf32>, vector<4x288xf32>, vector<4x288xf32>, vector<4x288xf32>, vector<4x288xf32>, vector<4x288xf32>, vector<4x288xf32>, vector<4x288xf32>, vector<4x288xf32> -> vector<36x288xf32>
    %c0_18 = arith.constant 0 : index
    %c0_19 = arith.constant 0 : index
    %19 = vector.load %arg2[%c0_18, %c0_19] : memref<32x36xf32, #tpu.memory_space<vmem>>, vector<32x36xf32>
    %cst = arith.constant dense<0.000000e+00> : vector<32x288xf32>
    %20 = tpu.matmul %19, %18, %cst {dimension_numbers = #tpu.dot_dimension_numbers<[1], [0], [0], [1], [0, 0, 1, 1], [], []>} : vector<32x36xf32>, vector<36x288xf32>, vector<32x288xf32> -> vector<32x288xf32>
    %c0_20 = arith.constant 0 : index
    %c0_21 = arith.constant 0 : index
    %21 = vector.load %arg3[%c0_20, %c0_21] : memref<32x1xf32, #tpu.memory_space<vmem>>, vector<32x1xf32>
    %22 = vector.broadcast %21 : vector<32x1xf32> to vector<32x288xf32>
    %23 = arith.addf %20, %22 : vector<32x288xf32>
    %cst_22 = arith.constant 0.000000e+00 : f32
    %24 = vector.broadcast %cst_22 : f32 to vector<32x288xf32>
    %25 = arith.maximumf %23, %24 : vector<32x288xf32>
    %c0_23 = arith.constant 0 : index
    %c0_24 = arith.constant 0 : index
    %26 = vector.load %arg4[%c0_23, %c0_24] : memref<1x32xf32, #tpu.memory_space<vmem>>, vector<1x32xf32>
    %cst_25 = arith.constant dense<0.000000e+00> : vector<1x288xf32>
    %27 = tpu.matmul %26, %25, %cst_25 {dimension_numbers = #tpu.dot_dimension_numbers<[1], [0], [0], [1], [0, 0, 1, 1], [], []>} : vector<1x32xf32>, vector<32x288xf32>, vector<1x288xf32> -> vector<1x288xf32>
    %c0_26 = arith.constant 0 : index
    %28 = memref.load %arg5[%c0_26] : memref<1xf32, #tpu.memory_space<smem>>
    %29 = vector.broadcast %28 : f32 to vector<1x288xf32>
    %30 = arith.addf %27, %29 : vector<1x288xf32>
    %c0_27 = arith.constant 0 : index
    %c0_28 = arith.constant 0 : index
    %c0_29 = arith.constant 0 : index
    %31 = vector.load %arg6[%c0_27, %c0_28, %c0_29] : memref<1x1x288xf32, #tpu.memory_space<vmem>>, vector<1x1x288xf32>
    %32 = vector.shape_cast %31 : vector<1x1x288xf32> to vector<1x288xf32>
    %33 = vector.shape_cast %30 : vector<1x288xf32> to vector<1x1x288xf32>
    tpu.vector_store %arg6[%c0_27, %c0_28, %c0_29], %33 {strides = array<i32>} : memref<1x1x288xf32, #tpu.memory_space<vmem>>, vector<1x1x288xf32>,
    return
  }
  func.func @transform_0(%arg0: i32) -> (i32, i32, i32) {
    %c0_i32 = arith.constant 0 : i32
    %c0_i32_0 = arith.constant 0 : i32
    %c0_i32_1 = arith.constant 0 : i32
    return %arg0, %c0_i32, %c0_i32_0 : i32, i32, i32
  }
  func.func @transform_1(%arg0: i32) -> (i32, i32) {
    %c0_i32 = arith.constant 0 : i32
    %c0_i32_0 = arith.constant 0 : i32
    %c0_i32_1 = arith.constant 0 : i32
    return %c0_i32, %c0_i32_0 : i32, i32
  }
  func.func @transform_2(%arg0: i32) -> (i32, i32) {
    %c0_i32 = arith.constant 0 : i32
    %c0_i32_0 = arith.constant 0 : i32
    %c0_i32_1 = arith.constant 0 : i32
    return %c0_i32, %c0_i32_0 : i32, i32
  }
  func.func @transform_3(%arg0: i32) -> (i32, i32) {
    %c0_i32 = arith.constant 0 : i32
    %c0_i32_0 = arith.constant 0 : i32
    %c0_i32_1 = arith.constant 0 : i32
    return %c0_i32, %c0_i32_0 : i32, i32
  }
  func.func @transform_4(%arg0: i32) -> i32 {
    %c0_i32 = arith.constant 0 : i32
    %c0_i32_0 = arith.constant 0 : i32
    return %c0_i32 : i32
  }
  func.func @transform_5(%arg0: i32) -> (i32, i32, i32) {
    %c0_i32 = arith.constant 0 : i32
    %c0_i32_0 = arith.constant 0 : i32
    %c0_i32_1 = arith.constant 0 : i32
    return %arg0, %c0_i32, %c0_i32_0 : i32, i32, i32
  }
}

</mosaic_0001>

<bundles_post_ra>
// kernel: model_forward.1
= control target key start
LH: loop header
LB: loop body
LE: loop exit
PB: predicated region body
PF: predicated region fallthrough
CT: control target
= control target key end

     0   :  { %s946_s20 = smov 0   ;;  %s1067_s0 = inlined_call_operand.vmem [shape: f32[2,4,342], index: 0, kind: input, shape index: {}]   ;;  %s1068_s1 = inlined_call_operand.vmem [shape: f32[32,36], index: 1, kind: input, shape index: {}]   ;;  %s1069_s2 = inlined_call_operand.vmem [shape: f32[32,1], index: 2, kind: input, shape index: {}]   ;;  %s1070_s3 = inlined_call_operand.vmem [shape: f32[1,32], index: 3, kind: input, shape index: {}]   ;;  %s1071_s4 = inlined_call_operand.<no memory space> [shape: f32[1], index: 4, kind: input, shape index: {}]   ;;  %s1072_s5 = inlined_call_operand.vmem [shape: f32[2,1,288], index: 5, kind: output, shape index: {}]  }
   0x1   :  { %10 = sst [smem:[#allocation2]] %s1071_s4 }
   0x2 LB: > { %s804_s21 = sadd.s32 4294967295, %s899_s20   ;;  %p808_p0 = scmp.ge.s32.totalorder %s899_s20, 1  ;;  %s899_s20 = sphi %s946_s20, %s16_s20  }
   0x3   : > { %p188_p1 = scmp.lt.s32.totalorder %s899_s20, 3 }
   0x5   : > { %p189_p2 = pnand %p808_p0, %p188_p1 }
   0x6   : > { %p215_p3 = scmp.lt.s32.totalorder (!%p189_p2), %s804_s21, 1  ;;  %s901_s25 = smov (!%p189_p2), 92  }
   0x7   : > { %192 = sbr.rel (%p189_p2) target bundleno = 605 (0x25d), region = 40  ;;  %s902_s26 = smov (!%p189_p2), 90  }
   0x8   : > { %s903_s27 = smov (!%p189_p2), 91   ;;  %s904_s28 = smov (!%p189_p2), 109  }
   0x9   : > { %s905_s29 = smov (!%p189_p2), 108   ;;  %s906_s30 = smov (!%p189_p2), 126  }
   0xa   : > { %s907_s6 = smov (!%p189_p2), 110   ;;  %s909_s9 = smov (!%p189_p2), 127  }
   0xc   : > { %s1074_s21 = smov (!%p215_p3, %s804_s21), 1  ;;  %v989_v5 = vld [vmem:[%s1068_s1] sm:$0xff]  ;;  %vm366_vm0 = vcmask 293888   ;;  %v908_v6 = vmov 0.0   ;;  %v345_v7 = vld [vmem:[%s1069_s2 + $0x18] sm:$0xff]  ;;  %v344_v8 = vld [vmem:[%s1069_s2 + $0x10] sm:$0xff] }
   0xd   : > { %s866_s4 = smul.u32 12, %s1074_s21  ;;  %849 = vmatprep.mubr.msk.f32.mxu1 %vm366_vm0, %v989_v5  ;;  %449 = vmatprep.mubr.f32.mxu0 %v908_v6  ;;  %v910_v9 = vmov 0   ;;  %v342_v10 = vld [vmem:[%s1069_s2] sm:$0xff]  ;;  %v343_v11 = vld [vmem:[%s1069_s2 + $0x8] sm:$0xff]  ;;  %vm325_vm1 = vcmask 1043456   ;;  %vm322_vm2 = vcmask 736256  }
   0xe   : > { %888 = vset.pattern.permute.xlu0 %v910_v9  ;;  %889 = vset.pattern.permute.xlu1 %v910_v9  ;;  %vm310_vm3 = vcmask 744448   ;;  %vm298_vm4 = vcmask 752640   ;;  %vm274_vm5 = vcmask 891904   ;;  %vm286_vm6 = vcmask 883712   ;;  %v339_v62 = vld [vmem:[%s1068_s1 + $0x8] sm:$0xff] }
   0xf   : > { %s219_s24 = scalar_lea.vmem %s1067_s0, %s866_s4  ;;  %vm250_vm7 = vcmask 1031168   ;;  %vm262_vm8 = vcmask 900096   ;;  %vm238_vm9 = vcmask 1039360   ;;  %vm911_vm10 = vmmov 0  }
  0x10   : > { %v960_v0 = vld [vmem:[%s219_s24 + $0x8] sm:$0xf]  ;;  %v962_v1 = vld [vmem:[%s219_s24] sm:$0xff]  ;;  %vm574_vm11 = vcmask 261120  }
  0x11   : > { %296 = vrot.lane.b32.xlu1 %v960_v0, %s901_s25  ;;  %320 = vrot.lane.b32.xlu0 %v960_v0, %s902_s26  ;;  %v968_v2 = vcombine.high %v962_v1, %v962_v1  ;;  %v231_v3 = vcombine.low %v960_v0, %v960_v0  ;;  %v230_v4 = vcombine.low %v962_v1, %v962_v1 }
  0x15   : > { %306 = vrot.lane.b32.xlu0 %v962_v1, %s903_s27  ;;  %294 = vrot.lane.b32.xlu1 %v968_v2, %s901_s25 }
  0x19   : > { %308 = vrot.lane.b32.xlu1 %v231_v3, %s903_s27  ;;  %318 = vrot.lane.b32.xlu0 %v968_v2, %s902_s26 }
  0x1d   : > { %292 = vrot.lane.b32.xlu1 %v962_v1, %s901_s25  ;;  %316 = vrot.lane.b32.xlu0 %v962_v1, %s902_s26 }
  0x21   : > { %270 = vrot.lane.b32.xlu1 %v968_v2, %s904_s28  ;;  %304 = vrot.lane.b32.xlu0 %v230_v4, %s903_s27  ;;  %s572_s27 = sld [smem:[#allocation2]] }
  0x25   : > { %282 = vrot.lane.b32.xlu1 %v962_v1, %s905_s29  ;;  %272 = vrot.lane.b32.xlu0 %v960_v0, %s904_s28 }
  0x29   : > { %268 = vrot.lane.b32.xlu1 %v962_v1, %s904_s28  ;;  %284 = vrot.lane.b32.xlu0 %v231_v3, %s905_s29  ;;  %s867_s28 = smul.u32 3, %s1074_s21 }
  0x2d   : > { %246 = vrot.lane.b32.xlu1 %v968_v2, %s906_s30  ;;  %280 = vrot.lane.b32.xlu0 %v230_v4, %s905_s29 }
  0x31   : > { %258 = vrot.lane.b32.xlu1 %v962_v1, %s907_s6  ;;  %248 = vrot.lane.b32.xlu0 %v960_v0, %s906_s30 }
  0x35   : > { %244 = vrot.lane.b32.xlu1 %v962_v1, %s906_s30  ;;  %260 = vrot.lane.b32.xlu0 %v231_v3, %s907_s6 }
  0x39   : > { %234 = vrot.lane.b32.xlu1 %v962_v1, %s909_s9  ;;  %256 = vrot.lane.b32.xlu0 %v230_v4, %s907_s6  ;;  %s223_s6 = scalar_lea.vmem %s1072_s5, %s867_s28 }
  0x3d   : > { %232 = vrot.lane.b32.xlu1 %v230_v4, %s909_s9  ;;  %236 = vrot.lane.b32.xlu0 %v231_v3, %s909_s9  ;;  %v340_v4 = vld [vmem:[%s1068_s1 + $0x10] sm:$0xff] }
  0x41   : > { %363 = vperm.xlu0 %888, %v345_v7   ;;  %358 = vperm.xlu1 %889, %v344_v8  }
  0x45   : > { %348 = vperm.xlu0 %888, %v342_v10   ;;  %353 = vperm.xlu1 %889, %v343_v11  }
  0x83   : > { %v297_v12 = vpop.permute.xlu1 %296  ;;  %v321_v13 = vpop.permute.xlu0 %320 }
  0x84   : > { %839 = vmatprep.subr.msk.mxu1 %vm325_vm1, %v321_v13 }
  0x85   : > { %840 = vmatpush3.msk.msra.mxu1 %vm325_vm1, %v321_v13 }
  0x87   : > { %v307_v14 = vpop.permute.xlu0 %306  ;;  %v295_v15 = vpop.permute.xlu1 %294 }
  0x88   : > { %v300_v23 = vsel %vm298_vm4, %v295_v15, %v297_v12 }
  0x8b   : > { %v309_v16 = vpop.permute.xlu1 %308  ;;  %v319_v17 = vpop.permute.xlu0 %318 }
  0x8c   : > { %v324_v18 = vsel %vm322_vm2, %v319_v17, %v321_v13  ;;  %v337_v19 = vsel %vm325_vm1, %v297_v12, %v309_v16  ;;  %v312_v20 = vsel %vm310_vm3, %v307_v14, %v309_v16 }
  0x8d   : > { %810 = vmatprep.subr.msk.mxu0 %vm325_vm1, %v324_v18  ;;  %841 = vmatprep.subr.mxu1 %v337_v19  ;;  %v336_v25 = vsel %vm325_vm1, %v300_v23, %v312_v20 }
  0x8e   : > { %842 = vmatpush3.msra.mxu1 %v337_v19 }
  0x8f   : > { %v293_v21 = vpop.permute.xlu1 %292  ;;  %v317_v22 = vpop.permute.xlu0 %316 }
  0x90   : > { %v323_v24 = vsel %vm322_vm2, %v317_v22, %v319_v17  ;;  %v299_v28 = vsel %vm298_vm4, %v293_v21, %v295_v15 }
  0x91   : > { %811 = vmatpush1.msk.msra.mxu0 %vm325_vm1, %v323_v24 }
  0x92   : > { %409 = vmatprep.subr.mxu0 %v336_v25 }
  0x93   : > { %v271_v26 = vpop.permute.xlu1 %270  ;;  %v305_v27 = vpop.permute.xlu0 %304 }
  0x94   : > { %v311_v29 = vsel %vm310_vm3, %v305_v27, %v307_v14 }
  0x95   : > { %v335_v30 = vsel %vm325_vm1, %v299_v28, %v311_v29  ;;  %v571_v29 = vld [vmem:[%s1070_s3] sm:$0x1] }
  0x96   : > { %410 = vmatpush1.msra.mxu0 %v335_v30 }
  0x97   : > { %v283_v31 = vpop.permute.xlu1 %282  ;;  %v273_v32 = vpop.permute.xlu0 %272 }
  0x98   : > { %v276_v35 = vsel %vm274_vm5, %v271_v26, %v273_v32 }
  0x9b   : > { %v269_v33 = vpop.permute.xlu1 %268  ;;  %v285_v34 = vpop.permute.xlu0 %284 }
  0x9c   : > { %v288_v36 = vsel %vm286_vm6, %v283_v31, %v285_v34  ;;  %v334_v37 = vsel %vm325_vm1, %v273_v32, %v285_v34  ;;  %v275_v41 = vsel %vm274_vm5, %v269_v33, %v271_v26 }
  0x9d   : > { %843 = vmatprep.subr.mxu1 %v334_v37  ;;  %v333_v38 = vsel %vm325_vm1, %v276_v35, %v288_v36 }
  0x9e   : > { %411 = vmatprep.subr.mxu0 %v333_v38  ;;  %844 = vmatpush3.msra.mxu1 %v334_v37 }
  0x9f   : > { %v247_v39 = vpop.permute.xlu1 %246  ;;  %v281_v40 = vpop.permute.xlu0 %280 }
  0xa0   : > { %v287_v42 = vsel %vm286_vm6, %v281_v40, %v283_v31 }
  0xa1   : > { %v332_v43 = vsel %vm325_vm1, %v275_v41, %v287_v42 }
  0xa2   : > { %412 = vmatpush1.msra.mxu0 %v332_v43 }
  0xa3   : > { %v259_v44 = vpop.permute.xlu1 %258  ;;  %v249_v45 = vpop.permute.xlu0 %248 }
  0xa4   : > { %v252_v48 = vsel %vm250_vm7, %v247_v39, %v249_v45 }
  0xa7   : > { %v245_v46 = vpop.permute.xlu1 %244  ;;  %v261_v47 = vpop.permute.xlu0 %260 }
  0xa8   : > { %v264_v49 = vsel %vm262_vm8, %v259_v44, %v261_v47  ;;  %v331_v50 = vsel %vm325_vm1, %v249_v45, %v261_v47  ;;  %v251_v54 = vsel %vm250_vm7, %v245_v46, %v247_v39  ;;  %v912_v46 = vmov 1966171168  }
  0xa9   : > { %845 = vmatprep.subr.mxu1 %v331_v50  ;;  %v330_v51 = vsel %vm325_vm1, %v252_v48, %v264_v49  ;;  %v724_v47 = vunpack.c.l.s4 %v912_v46  ;;  %v726_v48 = vlaneseq }
  0xaa   : > { %413 = vmatprep.subr.mxu0 %v330_v51  ;;  %846 = vmatpush3.msra.mxu1 %v331_v50  ;;  %v573_v51 = vstv %s572_s27 }
  0xab   : > { %v235_v52 = vpop.permute.xlu1 %234  ;;  %v257_v53 = vpop.permute.xlu0 %256  ;;  %v725_v49 = vunpack.c.0.s8 %v724_v47  ;;  %v727_v50 = vshrl.u32 %v726_v48, 7  ;;  %vm748_vm12 = vcmp.lt.s32.totalorder %v726_v48, 288 }
  0xac   : > { %v263_v55 = vsel %vm262_vm8, %v257_v53, %v259_v44 }
  0xad   : > { %v329_v56 = vsel %vm325_vm1, %v251_v54, %v263_v55  ;;  %v728_v53 = vsub.s32 %v725_v49, %v727_v50 }
  0xae   : > { %414 = vmatpush1.msra.mxu0 %v329_v56 }
  0xaf   : > { %v233_v57 = vpop.permute.xlu1 %232  ;;  %v237_v58 = vpop.permute.xlu0 %236 }
  0xb0   : > { %v239_v59 = vsel %vm238_vm9, %v233_v57, %v235_v52  ;;  %v240_v60 = vsel %vm238_vm9, %v235_v52, %v237_v58  ;;  %v328_v61 = vsel %vm325_vm1, %v960_v0, %v237_v58  ;;  %v341_v0 = vld [vmem:[%s1068_s1 + $0x18] sm:$0xff] }
  0xb1   : > { %847 = vmatprep.subr.mxu1 %v328_v61  ;;  %v327_v63 = vsel %vm325_vm1, %v968_v2, %v240_v60  ;;  %v326_v3 = vsel %vm325_vm1, %v962_v1, %v239_v59 }
  0xb2   : > { %415 = vmatprep.subr.mxu0 %v327_v63  ;;  %848 = vmatpush3.msra.mxu1 %v328_v61 }
  0xb3   : > { %416 = vmatpush1.msra.mxu0 %v326_v3  ;;  %850 = vmatmul.mubr.msk.f32.vlgmr.msra.gmra.mxu1 %vm366_vm0, %v339_v62 }
  0xb4   : > { %812 = vmatmul.mubr.msk.f32.vlgmr.msra.gmra.mxu0 %vm366_vm0, %v989_v5  ;;  %852 = vmatprep.mubr.msk.f32.mxu1 %vm366_vm0, %v340_v4 }
  0xb5   : > { %455 = vmatprep.mubr.f32.mxu0 %v908_v6  ;;  %855 = vmatprep.subr.mxu0 %v908_v6 }
  0xb7   : > { %853 = vmatmul.mubr.msk.f32.gmra.mxu1 %vm366_vm0, %v341_v0 }
  0xb8   : > { %813 = vmatmul.mubr.msk.f32.gmra.mxu0 %vm366_vm0, %v339_v62  ;;  %642 = vmatprep.mubr.f32.mxu1 %v908_v6 }
  0xb9   : > { %461 = vmatprep.mubr.f32.mxu0 %v908_v6 }
  0xbc   : > { %814 = vmatmul.mubr.msk.f32.gmra.mxu0 %vm366_vm0, %v340_v4  ;;  %v359_v1 = vpop.permute.xlu1 %358  ;;  %v364_v2 = vpop.permute.xlu0 %363 }
  0xbd   : > { %467 = vmatprep.mubr.f32.mxu0 %v908_v6 }
  0xc0   : > { %815 = vmatmul.mubr.msk.f32.gmra.mxu0 %vm366_vm0, %v341_v0  ;;  %v354_v11 = vpop.permute.xlu1 %353  ;;  %v349_v15 = vpop.permute.xlu0 %348 }
  0xc1   : > { %863 = vmatprep.mubr.msk.f32.mxu0 %vm911_vm10, %v908_v6 }
 0x173   : > { %v851_v5 = vpop.f32.mrf.mxu1 }
 0x174   : > { %v451_v7 = vpop.f32.mrf.mxu0  ;;  %v546_v13 = vadd.f32 %v851_v5, %v354_v11 }
 0x175   : > { %v540_v8 = vpop.f32.mrf.mxu1 }
 0x176   : > { %v453_v9 = vpop.f32.mrf.mxu0  ;;  %v541_v17 = vadd.f32 %v540_v8, %v349_v15  ;;  %v564_v21 = vmax.f32 %v546_v13, 0.0 }
 0x177   : > { %v854_v10 = vpop.f32.mrf.mxu1  ;;  %v454_v37 = vadd.f32 %v453_v9, %v349_v15 }
 0x178   : > { %v556_v12 = vadd.f32 %v854_v10, %v364_v2  ;;  %v457_v14 = vpop.f32.mrf.mxu0  ;;  %v561_v24 = vmax.f32 %v541_v17, 0.0 }
 0x179   : > { %v550_v16 = vpop.f32.mrf.mxu1  ;;  %v458_v35 = vadd.f32 %v457_v14, %v354_v11  ;;  %v560_v42 = vmax.f32 %v454_v37, 0.0 }
 0x17a   : > { %v570_v18 = vmax.f32 %v556_v12, 0.0  ;;  %v551_v19 = vadd.f32 %v550_v16, %v359_v1  ;;  %v459_v20 = vpop.f32.mrf.mxu0 }
 0x17b   : > { %v460_v33 = vadd.f32 %v459_v20, %v354_v11  ;;  %v562_v41 = vmax.f32 %v458_v35, 0.0 }
 0x17c   : > { %v567_v22 = vmax.f32 %v551_v19, 0.0  ;;  %v463_v23 = vpop.f32.mrf.mxu0  ;;  %856 = vmatpush3.msra.mxu0 %v570_v18 }
 0x17d   : > { %857 = vmatprep.subr.mxu0 %v908_v6  ;;  %v464_v32 = vadd.f32 %v463_v23, %v359_v1  ;;  %v563_v40 = vmax.f32 %v460_v33, 0.0 }
 0x17e   : > { %v465_v25 = vpop.f32.mrf.mxu0  ;;  %858 = vmatpush3.msra.mxu0 %v567_v22 }
 0x17f   : > { %859 = vmatprep.subr.mxu0 %v908_v6  ;;  %v466_v30 = vadd.f32 %v465_v25, %v359_v1  ;;  %v565_v39 = vmax.f32 %v464_v32, 0.0 }
 0x180   : > { %v469_v26 = vpop.f32.mrf.mxu0  ;;  %860 = vmatpush3.msra.mxu0 %v564_v21 }
 0x181   : > { %861 = vmatprep.subr.mxu0 %v908_v6  ;;  %v470_v27 = vadd.f32 %v469_v26, %v364_v2  ;;  %v566_v38 = vmax.f32 %v466_v30, 0.0  ;;  %v452_v6 = vadd.f32 %v451_v7, %v349_v15 }
 0x182   : > { %v471_v28 = vpop.f32.mrf.mxu0  ;;  %862 = vmatpush3.msra.mxu0 %v561_v24 }
 0x183   : > { %v472_v31 = vadd.f32 %v471_v28, %v364_v2  ;;  %864 = vmatmul.mubr.msk.f32.vlgmr.msra.gmra.mxu0 %vm574_vm11, %v571_v29  ;;  %v568_v36 = vmax.f32 %v470_v27, 0.0  ;;  %v559_v43 = vmax.f32 %v452_v6, 0.0 }
 0x185   : > { %v569_v34 = vmax.f32 %v472_v31, 0.0 }
 0x187   : > { %602 = vmatprep.subr.mxu1 %v569_v34 }
 0x188   : > { %603 = vmatpush1.msra.mxu1 %v568_v36 }
 0x189   : > { %604 = vmatprep.subr.mxu1 %v566_v38 }
 0x18a   : > { %605 = vmatpush1.msra.mxu1 %v565_v39 }
 0x18b   : > { %606 = vmatprep.subr.mxu1 %v563_v40 }
 0x18c   : > { %607 = vmatpush1.msra.mxu1 %v562_v41 }
 0x18d   : > { %608 = vmatprep.subr.mxu1 %v560_v42 }
 0x18e   : > { %609 = vmatpush1.msra.mxu1 %v559_v43 }
 0x18f   : > { %821 = vmatmul.mubr.msk.f32.vlgmr.msra.gmra.mxu1 %vm574_vm11, %v571_v29 }
 0x243   : > { %v715_v44 = vpop.f32.mrf.mxu0 }
 0x244   : > { %v716_v54 = vadd.f32 %v715_v44, %v573_v51 }
 0x245   : > { %v865_v45 = vpop.f32.mrf.mxu0 }
 0x246   : > { %v736_v59 = vrot.slane %v716_v54, %v728_v53 }
 0x24f   : > { %v644_v52 = vpop.f32.mrf.mxu1 }
 0x250   : > { %v645_v56 = vadd.f32 %v644_v52, %v573_v51 }
 0x251   : > { %v646_v55 = vpop.f32.mrf.mxu1 }
 0x252   : > { %v647_v57 = vadd.f32 %v646_v55, %v573_v51 }
 0x254   : > { %v722_v58 = vcombine.low %v645_v56, %v647_v57 }
 0x256   : > { %v729_v60 = vrot.slane %v722_v58, %v728_v53 }
 0x258   : > { %v737_v61 = vcombine.low %v729_v60, %v736_v59 }
 0x25a   : > { %v744_v62 = vrot.slane %v737_v61, %v728_v53 }
 0x25c   : > { %750 = vst.msk [vmem:[%s223_s6] sm:$0x7] %vm748_vm12, %v744_v62 }
 0x25d PF: > { %s16_s20 = sadd.s32 1, %s899_s20  }
 0x25e   : > { %p13_p4 = scmp.ge.s32.totalorder %s16_s20, 4  }
 0x260   :  { %15 = sbr.rel (!%p13_p4) target bundleno = 2 (0x2), region = 70 }

</bundles_post_ra>
